<compile_context>
chip_gen: v5e
topology: v5e:2x2
jax: 0.10.0
libtpu: 0.0.40
codegen_flags: <defaults>
</compile_context>

<pallas_src>
import jax
import jax.numpy as jnp
from jax.experimental import pallas as pl
from jax.experimental.pallas import tpu as pltpu


def _round_up(a, b):
    return (a + b - 1) // b * b


def _gemm_bias_relu_kernel(p_ref, w_ref, b_ref, o_ref):
    """Single-K-tile body: (tm, K) @ (K, C) on the MXU, + folded BN bias, ReLU."""
    acc = jnp.dot(p_ref[...], w_ref[...], preferred_element_type=jnp.float32)
    o_ref[...] = jnp.maximum(acc + b_ref[...], 0.0).astype(o_ref.dtype)


def _gemm_bias_relu_kernel_ktiled(p_ref, w_ref, b_ref, o_ref, acc_ref):
    """K-tiled body: accumulate (tm, tk) @ (tk, C) into an f32 VMEM scratch."""
    k = pl.program_id(1)

    @pl.when(k == 0)
    def _():
        acc_ref[...] = jnp.zeros_like(acc_ref)

    acc_ref[...] += jnp.dot(p_ref[...], w_ref[...],
                            preferred_element_type=jnp.float32)

    @pl.when(k == pl.num_programs(1) - 1)
    def _():
        o_ref[...] = jnp.maximum(acc_ref[...] + b_ref[...], 0.0).astype(o_ref.dtype)


def conv_bn_relu(x_nchw, weight_oihw, gamma, beta, running_mean, running_var,
                 eps=1e-5, kernel=3, stride=1, *,
                 compute_dtype=jnp.bfloat16, out_dtype=jnp.float32,
                 tm=512, tk=512, out_layout="NCHW"):
    """ConvBNReLU forward (eval-mode BN). NCHW in; NCHW or NHWC out."""
    assert stride == 1, "this synthetic kernel implements stride=1"
    assert out_layout in ("NCHW", "NHWC")
    N, Cin, H, W = x_nchw.shape
    Cout = weight_oihw.shape[0]
    KH = KW = kernel
    pad = kernel // 2
    K = KH * KW * Cin
    M = N * H * W

    # ---- BN fold (eval-mode running stats), kept in f32 ---------------------
    inv_std = jax.lax.rsqrt(running_var.astype(jnp.float32) + eps)
    scale = gamma.astype(jnp.float32) * inv_std                          # (Cout,)
    bias = beta.astype(jnp.float32) - running_mean.astype(jnp.float32) * scale

    w = jnp.transpose(weight_oihw.astype(jnp.float32), (2, 3, 1, 0))     # (KH,KW,Cin,Cout)
    w = w * scale[None, None, None, :]                                   # fold BN scale
    w2d = w.reshape(K, Cout).astype(compute_dtype)

    # ---- im2col built directly in compute_dtype (half the HBM bytes in bf16)
    x = jnp.transpose(x_nchw, (0, 2, 3, 1)).astype(compute_dtype)        # NHWC
    xp = jnp.pad(x, ((0, 0), (pad, pad), (pad, pad), (0, 0)))
    taps = [xp[:, kh:kh + H, kw:kw + W, :] for kh in range(KH) for kw in range(KW)]
    patches = jnp.concatenate(taps, axis=-1).reshape(M, K)               # (M, K)

    # ---- tiling --------------------------------------------------------------
    tm = max(8, _round_up(min(int(tm), _round_up(M, 8)), 8))
    steps_cap = max(8, _round_up(pl.cdiv(M, 8), 8))    # keep ~8 M-steps when possible
    if tm > steps_cap:
        tm = steps_cap
    Mp = _round_up(M, tm)

    if K <= tk:                          # single K tile: whole contraction resident
        tk_eff, Kp = K, K
    else:                                # K-tiled accumulator path (bounds VMEM on v7x)
        tk_eff = _round_up(int(tk), 128)
        Kp = _round_up(K, tk_eff)
    grid_k = Kp // tk_eff

    # Small Cout: unpadded output (full-dim last axis) -> no 128/Cout writeback
    # inflation and no post-kernel column slice. Large Cout: pad to 128 lanes.
    Cp = Cout if Cout < 128 else _round_up(Cout, 128)

    if Mp != M or Kp != K:
        patches = jnp.pad(patches, ((0, Mp - M), (0, Kp - K)))
    if Kp != K or Cp != Cout:
        w2d = jnp.pad(w2d, ((0, Kp - K), (0, Cp - Cout)))
    bias2d = jnp.pad(bias.reshape(1, Cout), ((0, 0), (0, Cp - Cout)))    # stays f32

    # ---- explicit VMEM budget (scoped defaults: 16 MiB v5e, 32 MiB v6e/v7x) --
    in_bytes = jnp.dtype(compute_dtype).itemsize
    out_bytes = jnp.dtype(out_dtype).itemsize
    vmem_est = (2 * tm * tk_eff * in_bytes      # patch double-buffer
                + 2 * tk_eff * Cp * in_bytes    # weight double-buffer
                + 2 * tm * Cp * out_bytes       # output double-buffer
                + tm * Cp * 4                   # f32 accumulator scratch
                + 2 * Cp * 4 + 4096)
    vmem_limit = int(min(max(2 * vmem_est, 32 * 1024 * 1024), 64 * 1024 * 1024))

    out_shape = jax.ShapeDtypeStruct((Mp, Cp), out_dtype)

    if grid_k == 1:
        out = pl.pallas_call(
            _gemm_bias_relu_kernel,
            out_shape=out_shape,
            grid_spec=pltpu.PrefetchScalarGridSpec(
                num_scalar_prefetch=0,
                grid=(Mp // tm,),                              # independent M tiles
                in_specs=[
                    pl.BlockSpec((tm, Kp), lambda i: (i, 0)),  # patch tile
                    pl.BlockSpec((Kp, Cp), lambda i: (0, 0)),  # resident weights
                    pl.BlockSpec((1, Cp), lambda i: (0, 0)),   # folded BN bias
                ],
                out_specs=pl.BlockSpec((tm, Cp), lambda i: (i, 0)),
            ),
            compiler_params=pltpu.CompilerParams(
                dimension_semantics=("parallel",),
                vmem_limit_bytes=vmem_limit),
        )(patches, w2d, bias2d)
    else:
        out = pl.pallas_call(
            _gemm_bias_relu_kernel_ktiled,
            out_shape=out_shape,
            grid_spec=pltpu.PrefetchScalarGridSpec(
                num_scalar_prefetch=0,
                grid=(Mp // tm, grid_k),                       # K last, "arbitrary"
                in_specs=[
                    pl.BlockSpec((tm, tk_eff), lambda i, k: (i, k)),
                    pl.BlockSpec((tk_eff, Cp), lambda i, k: (k, 0)),
                    pl.BlockSpec((1, Cp), lambda i, k: (0, 0)),
                ],
                out_specs=pl.BlockSpec((tm, Cp), lambda i, k: (i, 0)),
                scratch_shapes=[pltpu.VMEM((tm, Cp), jnp.float32)],
            ),
            compiler_params=pltpu.CompilerParams(
                dimension_semantics=("parallel", "arbitrary"),
                vmem_limit_bytes=vmem_limit),
        )(patches, w2d, bias2d)

    if Mp != M or Cp != Cout:
        out = out[:M, :Cout]
    out = out.reshape(N, H, W, Cout)                 # free row-major reshape (NHWC)
    if out_layout == "NHWC":
        return out
    return jnp.transpose(out, (0, 3, 1, 2))          # NCHW only at the model boundary


if __name__ == "__main__":
    eps = 1e-5

    def reference(x, weight, gamma, beta, mean, var):
        Cout = weight.shape[0]
        conv = jax.lax.conv_general_dilated(
            x, weight, window_strides=(1, 1), padding=((1, 1), (1, 1)),
            dimension_numbers=("NCHW", "OIHW", "NCHW"))
        g = gamma.reshape(1, Cout, 1, 1)
        b = beta.reshape(1, Cout, 1, 1)
        m = mean.reshape(1, Cout, 1, 1)
        v = var.reshape(1, Cout, 1, 1)
        return jnp.maximum(g * (conv - m) / jnp.sqrt(v + eps) + b, 0.0)

    def make_inputs(key, N, Cin, H, W, Cout, Kk):
        kx, kw, kg, kb, km, kv = jax.random.split(key, 6)
        x = jax.random.normal(kx, (N, Cin, H, W), dtype=jnp.float32)
        weight = jax.random.normal(kw, (Cout, Cin, Kk, Kk), dtype=jnp.float32) * 0.1
        gamma = 1.0 + 0.1 * jax.random.normal(kg, (Cout,), dtype=jnp.float32)
        beta = 0.1 * jax.random.normal(kb, (Cout,), dtype=jnp.float32)
        mean = 0.1 * jax.random.normal(km, (Cout,), dtype=jnp.float32)
        var = jnp.abs(jax.random.normal(kv, (Cout,), dtype=jnp.float32)) + 0.5
        return x, weight, gamma, beta, mean, var

    key = jax.random.PRNGKey(0)
    k1, k2 = jax.random.split(key)

    # Case 1: ConvBNReLU(in_planes=4, out_planes=8) shapes, default bf16 MXU path.
    x, w, g, b, m, v = make_inputs(k1, 2, 4, 16, 16, 8, 3)
    ref = reference(x, w, g, b, m, v)
    out = jax.block_until_ready(conv_bn_relu(x, w, g, b, m, v, eps=eps))
    assert out.shape == ref.shape, (out.shape, ref.shape)
    assert jnp.allclose(out, ref, atol=5e-2, rtol=5e-2), \
        float(jnp.max(jnp.abs(out - ref)))

    # f32 MXU path matches the f32 PyTorch module tightly.
    out_f32 = jax.block_until_ready(
        conv_bn_relu(x, w, g, b, m, v, eps=eps, compute_dtype=jnp.float32))
    assert jnp.allclose(out_f32, ref, atol=1e-3, rtol=1e-3), \
        float(jnp.max(jnp.abs(out_f32 - ref)))

    # Case 2: wider Cin to exercise the K-tiled accumulator path (grid_k > 1).
    x2, w2, g2, b2, m2, v2 = make_inputs(k2, 1, 32, 8, 8, 16, 3)
    ref2 = reference(x2, w2, g2, b2, m2, v2)
    out2 = jax.block_until_ready(
        conv_bn_relu(x2, w2, g2, b2, m2, v2, eps=eps, tk=128))
    assert jnp.allclose(out2, ref2, atol=5e-2, rtol=5e-2), \
        float(jnp.max(jnp.abs(out2 - ref2)))

    print("KERNEL_OK")
</pallas_src>

<mosaic_0001>
module attributes {stable_mosaic.version = 11 : i64} {
  func.func @_gemm_bias_relu_kernel(%arg0: i32, %arg1: memref<64x36xbf16, #tpu.memory_space<vmem>>, %arg2: memref<36x8xbf16, #tpu.memory_space<vmem>>, %arg3: memref<1x8xf32, #tpu.memory_space<vmem>>, %arg4: memref<64x8xf32, #tpu.memory_space<vmem>>) attributes {dimension_semantics = [#tpu.dimension_semantics<parallel>], iteration_bounds = array<i64: 8>, scalar_prefetch = 0 : i64, scratch_operands = 0 : i64, tpu.core_type = #tpu.core_type<tc>, window_params = [{transform_indices = @transform_0, window_bounds = array<i64: 64, 36>}, {pipeline_mode = #tpu.pipeline_mode<synchronous>, transform_indices = @transform_1, window_bounds = array<i64: 36, 8>}, {pipeline_mode = #tpu.pipeline_mode<synchronous>, transform_indices = @transform_2, window_bounds = array<i64: 1, 8>}, {transform_indices = @transform_3, window_bounds = array<i64: 64, 8>}]} {
    %c0 = arith.constant 0 : index
    %c0_0 = arith.constant 0 : index
    %0 = vector.load %arg1[%c0, %c0_0] : memref<64x36xbf16, #tpu.memory_space<vmem>>, vector<64x36xbf16>
    %c0_1 = arith.constant 0 : index
    %c0_2 = arith.constant 0 : index
    %1 = vector.load %arg2[%c0_1, %c0_2] : memref<36x8xbf16, #tpu.memory_space<vmem>>, vector<36x8xbf16>
    %cst = arith.constant dense<0.000000e+00> : vector<64x8xf32>
    %2 = tpu.matmul %0, %1, %cst {dimension_numbers = #tpu.dot_dimension_numbers<[1], [0], [0], [1], [0, 0, 1, 1], [], []>} : vector<64x36xbf16>, vector<36x8xbf16>, vector<64x8xf32> -> vector<64x8xf32>
    %c0_3 = arith.constant 0 : index
    %c0_4 = arith.constant 0 : index
    %3 = vector.load %arg3[%c0_3, %c0_4] : memref<1x8xf32, #tpu.memory_space<vmem>>, vector<1x8xf32>
    %4 = vector.broadcast %3 : vector<1x8xf32> to vector<64x8xf32>
    %5 = arith.addf %2, %4 : vector<64x8xf32>
    %cst_5 = arith.constant 0.000000e+00 : f32
    %6 = vector.broadcast %cst_5 : f32 to vector<64x8xf32>
    %7 = arith.maximumf %5, %6 : vector<64x8xf32>
    %c0_6 = arith.constant 0 : index
    %c0_7 = arith.constant 0 : index
    %8 = vector.load %arg4[%c0_6, %c0_7] : memref<64x8xf32, #tpu.memory_space<vmem>>, vector<64x8xf32>
    tpu.vector_store %arg4[%c0_6, %c0_7], %7 {strides = array<i32>} : memref<64x8xf32, #tpu.memory_space<vmem>>, vector<64x8xf32>,
    return
  }
  func.func @transform_0(%arg0: i32) -> (i32, i32) {
    %c0_i32 = arith.constant 0 : i32
    %c0_i32_0 = arith.constant 0 : i32
    return %arg0, %c0_i32 : i32, i32
  }
  func.func @transform_1(%arg0: i32) -> (i32, i32) {
    %c0_i32 = arith.constant 0 : i32
    %c0_i32_0 = arith.constant 0 : i32
    %c0_i32_1 = arith.constant 0 : i32
    return %c0_i32, %c0_i32_0 : i32, i32
  }
  func.func @transform_2(%arg0: i32) -> (i32, i32) {
    %c0_i32 = arith.constant 0 : i32
    %c0_i32_0 = arith.constant 0 : i32
    %c0_i32_1 = arith.constant 0 : i32
    return %c0_i32, %c0_i32_0 : i32, i32
  }
  func.func @transform_3(%arg0: i32) -> (i32, i32) {
    %c0_i32 = arith.constant 0 : i32
    %c0_i32_0 = arith.constant 0 : i32
    return %arg0, %c0_i32 : i32, i32
  }
}

</mosaic_0001>

<bundles_post_ra>
// kernel: tpu_custom_call.1
= control target key start
LH: loop header
LB: loop body
LE: loop exit
PB: predicated region body
PF: predicated region fallthrough
CT: control target
= control target key end

     0   :  { %s437_s12 = smov 0   ;;  %s478_s0 = inlined_call_operand.vmem [shape: bf16[512,36], index: 0, kind: input, shape index: {}]   ;;  %s479_s1 = inlined_call_operand.vmem [shape: bf16[36,8], index: 1, kind: input, shape index: {}]   ;;  %s480_s2 = inlined_call_operand.vmem [shape: f32[1,8], index: 2, kind: input, shape index: {}]   ;;  %s481_s3 = inlined_call_operand.vmem [shape: f32[512,8], index: 3, kind: output, shape index: {}]  }
   0x1 LB: > { %s346_s13 = sadd.s32 4294967295, %s415_s12   ;;  %p350_p0 = scmp.ge.s32.totalorder %s415_s12, 1  ;;  %s415_s12 = sphi %s437_s12, %s13_s12  }
   0x2   : > { %p138_p1 = scmp.lt.s32.totalorder %s415_s12, 9 }
   0x4   : > { %p139_p2 = pnand %p350_p0, %p138_p1 }
   0x5   : > { %s351_s16 = sshll.u32 (!%p139_p2), %s346_s13, 3 }
   0x6   : > { %142 = sbr.rel (%p139_p2) target bundleno = 175 (0xaf), region = 32  ;;  %p163_p3 = scmp.lt.s32.totalorder (!%p139_p2), %s351_s16, 63 }
   0xb   : > { %v187_v0 = vld [vmem:[%s479_s1 + $0x10] sm:$0x3]  ;;  %vm240_vm0 = vcmask 1041408   ;;  %s483_s16 = smov (!%p163_p3, %s351_s16), 63  ;;  %v390_v4 = vld [vmem:[%s479_s1 + $0x8] sm:$0xff]  ;;  %v389_v5 = vld [vmem:[%s479_s1] sm:$0xff] }
   0xc   : > { %v221_v1 = vunpack.c.l.b16 %v187_v0  ;;  %s352_s19 = sshll.u32 %s483_s16, 2  ;;  %vm227_vm1 = vcmask 293888   ;;  %v408_v10 = vld [vmem:[%s480_s2] ss:$0 sm:$0xff]  ;;  %s354_s27 = sshll.u32 %s483_s16, 3  ;;  %vm281_vm2 = vcmask 64512  }
   0xd   : > { %s166_s24 = scalar_lea.vmem %s478_s0, %s352_s19  ;;  %s172_s30 = scalar_lea.vmem %s481_s3, %s354_s27 }
   0xe   : > { %v224_v2 = vpack.c.b16 %v221_v1, %v221_v1  ;;  %v385_v6 = vld [vmem:[%s166_s24] sm:$0xff]  ;;  %v386_v7 = vld [vmem:[%s166_s24 + $0x8] sm:$0xff]  ;;  %v387_v8 = vld [vmem:[%s166_s24 + $0x10] sm:$0xff] }
   0xf   : > { %v388_v9 = vld [vmem:[%s166_s24 + $0x18] sm:$0xff] }
  0x10   : > { %v242_v3 = vsel %vm240_vm0, %v224_v2, 0 }
  0x11   : > { %249 = vmatpush.bf16.msra.mxu0 %v242_v3  ;;  %391 = vmatpush.bf16.msra.mxu1 %v242_v3 }
  0x12   : > { %392 = vmatpush.bf16.msra.mxu2 %v242_v3  ;;  %393 = vmatpush.bf16.msra.mxu3 %v242_v3 }
  0x15   : > { %250 = vmatpush.bf16.msra.mxu0 %v390_v4  ;;  %394 = vmatpush.bf16.msra.mxu1 %v390_v4 }
  0x16   : > { %395 = vmatpush.bf16.msra.mxu2 %v390_v4  ;;  %396 = vmatpush.bf16.msra.mxu3 %v390_v4 }
  0x19   : > { %251 = vmatpush.bf16.msra.mxu0 %v389_v5  ;;  %397 = vmatpush.bf16.msra.mxu1 %v389_v5 }
  0x1a   : > { %398 = vmatpush.bf16.msra.mxu2 %v389_v5  ;;  %399 = vmatpush.bf16.msra.mxu3 %v389_v5 }
  0x1c   : > { %379 = vmatmul.msk.bf16.vlgmr.msra.gmra.mxu0 %vm227_vm1, %v385_v6  ;;  %380 = vmatmul.msk.bf16.vlgmr.msra.gmra.mxu1 %vm227_vm1, %v386_v7 }
  0x1d   : > { %381 = vmatmul.msk.bf16.vlgmr.msra.gmra.mxu2 %vm227_vm1, %v387_v8  ;;  %382 = vmatmul.msk.bf16.vlgmr.msra.gmra.mxu3 %vm227_vm1, %v388_v9 }
  0x99   : > { %v253_v11 = vpop.f32.mrf.mxu0  ;;  %v258_v12 = vpop.f32.mrf.mxu1 }
  0x9a   : > { %v254_v13 = vadd.f32 %v408_v10, %v253_v11  ;;  %v259_v14 = vadd.f32 %v408_v10, %v258_v12 }
  0x9c   : > { %v273_v15 = vmax.f32 %v254_v13, 0.0  ;;  %v275_v16 = vmax.f32 %v259_v14, 0.0 }
  0x9e   : > { %282 = vst.msk [vmem:[%s172_s30] sm:$0xff] %vm281_vm2, %v273_v15 }
  0x9f   : > { %284 = vst.msk [vmem:[%s172_s30 + $0x10] sm:$0xff] %vm281_vm2, %v275_v16 }
  0xa0   : > { %v263_v17 = vpop.f32.mrf.mxu2  ;;  %v268_v18 = vpop.f32.mrf.mxu3 }
  0xa1   : > { %v264_v19 = vadd.f32 %v408_v10, %v263_v17  ;;  %v269_v20 = vadd.f32 %v408_v10, %v268_v18  ;;  %v255_v21 = vpop.f32.mrf.mxu0  ;;  %v260_v22 = vpop.f32.mrf.mxu1 }
  0xa2   : > { %v256_v23 = vadd.f32 %v408_v10, %v255_v21  ;;  %v261_v24 = vadd.f32 %v408_v10, %v260_v22 }
  0xa3   : > { %v277_v25 = vmax.f32 %v264_v19, 0.0  ;;  %v279_v26 = vmax.f32 %v269_v20, 0.0 }
  0xa4   : > { %v274_v27 = vmax.f32 %v256_v23, 0.0  ;;  %v276_v28 = vmax.f32 %v261_v24, 0.0 }
  0xa5   : > { %286 = vst.msk [vmem:[%s172_s30 + $0x20] sm:$0xff] %vm281_vm2, %v277_v25 }
  0xa6   : > { %288 = vst.msk [vmem:[%s172_s30 + $0x30] sm:$0xff] %vm281_vm2, %v279_v26 }
  0xa7   : > { %283 = vst.msk [vmem:[%s172_s30 + $0x8] sm:$0xff] %vm281_vm2, %v274_v27 }
  0xa8   : > { %285 = vst.msk [vmem:[%s172_s30 + $0x18] sm:$0xff] %vm281_vm2, %v276_v28  ;;  %v265_v29 = vpop.f32.mrf.mxu2  ;;  %v270_v30 = vpop.f32.mrf.mxu3 }
  0xa9   : > { %v266_v31 = vadd.f32 %v408_v10, %v265_v29  ;;  %v271_v32 = vadd.f32 %v408_v10, %v270_v30 }
  0xab   : > { %v278_v33 = vmax.f32 %v266_v31, 0.0  ;;  %v280_v34 = vmax.f32 %v271_v32, 0.0 }
  0xad   : > { %287 = vst.msk [vmem:[%s172_s30 + $0x28] sm:$0xff] %vm281_vm2, %v278_v33 }
  0xae   : > { %289 = vst.msk [vmem:[%s172_s30 + $0x38] sm:$0xff] %vm281_vm2, %v280_v34 }
  0xaf PF: > { %s13_s12 = sadd.s32 1, %s415_s12  }
  0xb0   : > { %p10_p4 = scmp.ge.s32.totalorder %s13_s12, 10  }
  0xb2   :  { %12 = sbr.rel (!%p10_p4) target bundleno = 1 (0x1), region = 62 }

</bundles_post_ra>
